<compile_context>
chip_gen: v6e
topology: v6e:2x2x1
jax: 0.10.0
libtpu: 0.0.40
codegen_flags: <defaults>
</compile_context>

<pallas_src>
import functools

import jax
import jax.numpy as jnp
from jax import lax
from jax.experimental import pallas as pl
from jax.experimental.pallas import tpu as pltpu


def _round_up(x, m):
    return (x + m - 1) // m * m


def _sepconv_kernel(x_ref, wdw_ref, wpw_ref, o_ref, dw_ref, *, mxu_dtype):
    """One (batch, H-strip, Cout-tile) grid step.

    x_ref  : (1, 1, TH+KH-1, Wp, Cin)  input strip incl. KH-1 halo rows (NHWC)
    wdw_ref: (KH, KW, Cin)             depthwise weights
    wpw_ref: (Cin, TCO)                pointwise weight tile
    o_ref  : (1, TH, Wo, TCO)          output strip tile
    dw_ref : (TH, Wo, Cin) f32         depthwise scratch, reused across Cout tiles
    """
    kh, kw, cin = wdw_ref.shape
    _, th, wo, tco = o_ref.shape

    # Depthwise conv: only recompute when the innermost (Cout-tile) grid index
    # is 0 -- the result is identical for every Cout tile of this strip.
    @pl.when(pl.program_id(2) == 0)
    def _():
        acc = jnp.zeros((th, wo, cin), jnp.float32)
        for i in range(kh):            # static unroll over the KH*KW taps
            for j in range(kw):
                tap = x_ref[0, 0, i:i + th, j:j + wo, :].astype(jnp.float32)
                acc = acc + tap * wdw_ref[i, j, :].astype(jnp.float32)
        dw_ref[...] = acc

    # Pointwise 1x1 conv: lane-dense (TH*Wo, Cin) @ (Cin, TCO) on the MXU,
    # bf16 (or f32) operands with f32 accumulation.
    lhs = dw_ref[...].reshape(th * wo, cin).astype(mxu_dtype)
    rhs = wpw_ref[...].astype(mxu_dtype)
    out = jnp.dot(lhs, rhs, preferred_element_type=jnp.float32)
    o_ref[...] = out.reshape(1, th, wo, tco).astype(o_ref.dtype)


def _pick_cout_tile(coutp):
    if coutp <= 512:
        return coutp
    for t in (512, 256, 128):
        if coutp % t == 0:
            return t
    return 128


def _pick_tile_h(ho, wp, wo, cin, tco, kh, in_bytes, out_bytes,
                 budget_bytes=8 * 1024 * 1024):
    """Largest H strip whose working set fits a conservative VMEM budget."""
    best = 1
    for th in range(1, ho + 1):
        cost = (2 * (th + kh - 1) * wp * cin * in_bytes   # double-buffered input strip
                + th * wo * cin * 4                       # f32 depthwise scratch
                + th * wo * tco * 4                       # f32 matmul result temp
                + 2 * th * wo * tco * out_bytes)          # double-buffered output strip
        if cost <= budget_bytes:
            best = th
    return best


def separable_conv2d(x_nchw, w_depthwise, w_pointwise, *, padding=0, stride=1,
                     dilation=1, tile_h=None, mxu_dtype=jnp.bfloat16):
    """Forward pass of SeperableConv2d.

    x_nchw      : (N, Cin, H, W)      -- PyTorch layout
    w_depthwise : (Cin, 1, KH, KW)    -- nn.Conv2d(groups=Cin) weight
    w_pointwise : (Cout, Cin, 1, 1)   -- nn.Conv2d 1x1 weight
    returns     : (N, Cout, Ho, Wo)   -- PyTorch layout
    """
    if stride != 1 or dilation != 1:
        # TODO(synk): stride > 1 / dilation are not implemented in this kernel.
        raise NotImplementedError("only stride=1, dilation=1 is supported")

    n, cin, h, w = x_nchw.shape
    cout = w_pointwise.shape[0]
    kh, kw = w_depthwise.shape[2], w_depthwise.shape[3]

    ho = h + 2 * padding - kh + 1
    wo = w + 2 * padding - kw + 1
    wp = w + 2 * padding

    # Lane-dense pointwise output: pad Cout up to a multiple of 128.
    coutp = _round_up(cout, 128)
    tile_co = _pick_cout_tile(coutp)

    in_bytes = jnp.dtype(x_nchw.dtype).itemsize
    if tile_h is None:
        tile_h = _pick_tile_h(ho, wp, wo, cin, tile_co, kh, in_bytes, in_bytes)
    tile_h = max(1, min(int(tile_h), ho))
    n_strips = pl.cdiv(ho, tile_h)
    ho_pad = n_strips * tile_h
    th_halo = tile_h + kh - 1

    # ---- glue (plain JAX): layout change, zero pad, halo'd strip gather ----
    x_nhwc = jnp.transpose(x_nchw, (0, 2, 3, 1))                   # (N,H,W,Cin)
    x_pad = jnp.pad(
        x_nhwc,
        ((0, 0), (padding, padding + (ho_pad - ho)), (padding, padding), (0, 0)))
    row_idx = (jnp.arange(n_strips) * tile_h)[:, None] + jnp.arange(th_halo)[None, :]
    x_strips = jnp.take(x_pad, row_idx, axis=1)    # (N, n_strips, TH+KH-1, Wp, Cin)

    wdw = jnp.transpose(w_depthwise[:, 0, :, :], (1, 2, 0))        # (KH,KW,Cin)
    wpw = jnp.transpose(w_pointwise[:, :, 0, 0], (1, 0))           # (Cin,Cout)
    wpw = jnp.pad(wpw, ((0, 0), (0, coutp - cout)))                # (Cin,Coutp)

    kernel = functools.partial(_sepconv_kernel, mxu_dtype=mxu_dtype)

    out_nhwc = pl.pallas_call(
        kernel,
        out_shape=jax.ShapeDtypeStruct((n, ho_pad, wo, coutp), x_nchw.dtype),
        grid_spec=pltpu.PrefetchScalarGridSpec(
            num_scalar_prefetch=0,
            grid=(n, n_strips, coutp // tile_co),
            in_specs=[
                pl.BlockSpec((1, 1, th_halo, wp, cin),
                             lambda b, hi, co: (b, hi, 0, 0, 0)),
                pl.BlockSpec((kh, kw, cin), lambda b, hi, co: (0, 0, 0)),
                pl.BlockSpec((cin, tile_co), lambda b, hi, co: (0, co)),
            ],
            out_specs=pl.BlockSpec((1, tile_h, wo, tile_co),
                                   lambda b, hi, co: (b, hi, 0, co)),
            scratch_shapes=[pltpu.VMEM((tile_h, wo, cin), jnp.float32)],
        ),
        compiler_params=pltpu.CompilerParams(
            dimension_semantics=("parallel", "parallel", "arbitrary"),
            vmem_limit_bytes=32 * 1024 * 1024,
        ),
    )(x_strips, wdw, wpw)

    out = out_nhwc[:, :ho, :, :cout]
    return jnp.transpose(out, (0, 3, 1, 2))                        # (N,Cout,Ho,Wo)


def _reference(x_nchw, w_depthwise, w_pointwise, *, padding):
    """Pure-JAX reference matching torch semantics (for verification)."""
    cin = x_nchw.shape[1]
    dn = lax.conv_dimension_numbers(x_nchw.shape, w_depthwise.shape,
                                    ("NCHW", "OIHW", "NCHW"))
    y = lax.conv_general_dilated(
        x_nchw, w_depthwise,
        window_strides=(1, 1),
        padding=[(padding, padding), (padding, padding)],
        dimension_numbers=dn,
        feature_group_count=cin,
        precision=lax.Precision.HIGHEST,
    )
    dn2 = lax.conv_dimension_numbers(y.shape, w_pointwise.shape,
                                     ("NCHW", "OIHW", "NCHW"))
    return lax.conv_general_dilated(
        y, w_pointwise,
        window_strides=(1, 1),
        padding=[(0, 0), (0, 0)],
        dimension_numbers=dn2,
        precision=lax.Precision.HIGHEST,
    )


if __name__ == "__main__":
    # Small config consistent with the module:
    # SeperableConv2d(input_channels=4, output_channels=8, kernel_size=3, padding=1)
    N, CIN, H, W = 2, 4, 16, 16
    COUT, K, PAD = 8, 3, 1

    key = jax.random.PRNGKey(0)
    k_x, k_dw, k_pw, k_x2 = jax.random.split(key, 4)

    x = jax.random.normal(k_x, (N, CIN, H, W), dtype=jnp.float32)
    w_dw = jax.random.normal(k_dw, (CIN, 1, K, K), dtype=jnp.float32) * 0.2
    w_pw = jax.random.normal(k_pw, (COUT, CIN, 1, 1), dtype=jnp.float32) * 0.2

    ref = _reference(x, w_dw, w_pw, padding=PAD)

    # 1) exact path (f32 MXU operands); tile_h=8 -> 2 H-strips per image.
    fwd_f32 = jax.jit(functools.partial(
        separable_conv2d, padding=PAD, tile_h=8, mxu_dtype=jnp.float32))
    out = fwd_f32(x, w_dw, w_pw)
    jax.block_until_ready(out)
    assert out.shape == (N, COUT, H, W), out.shape
    assert jnp.allclose(out, ref, atol=1e-4, rtol=1e-4), "f32 path mismatch"

    # 2) default fast path (bf16 MXU operands, f32 accumulation).
    fwd_bf16 = jax.jit(functools.partial(separable_conv2d, padding=PAD, tile_h=8))
    out_bf = fwd_bf16(x, w_dw, w_pw)
    jax.block_until_ready(out_bf)
    rel_err = jnp.max(jnp.abs(out_bf - ref)) / (jnp.max(jnp.abs(ref)) + 1e-6)
    assert rel_err < 2e-2, float(rel_err)

    # 3) ragged spatial shape: Ho not a multiple of tile_h exercises the
    #    padded final strip + output slicing path.
    x2 = jax.random.normal(k_x2, (1, CIN, 13, 11), dtype=jnp.float32)
    fwd2 = jax.jit(functools.partial(
        separable_conv2d, padding=PAD, tile_h=8, mxu_dtype=jnp.float32))
    out2 = fwd2(x2, w_dw, w_pw)
    jax.block_until_ready(out2)
    ref2 = _reference(x2, w_dw, w_pw, padding=PAD)
    assert out2.shape == (1, COUT, 13, 11), out2.shape
    assert jnp.allclose(out2, ref2, atol=1e-4, rtol=1e-4), "ragged path mismatch"

    print("KERNEL_OK")
</pallas_src>

<mosaic_0001>
module attributes {stable_mosaic.version = 11 : i64} {
  func.func @_sepconv_kernel(%arg0: i32, %arg1: i32, %arg2: i32, %arg3: memref<1x1x10x18x4xf32, #tpu.memory_space<vmem>>, %arg4: memref<3x3x4xf32, #tpu.memory_space<vmem>>, %arg5: memref<4x128xf32, #tpu.memory_space<vmem>>, %arg6: memref<1x8x16x128xf32, #tpu.memory_space<vmem>>, %arg7: memref<8x16x4xf32, #tpu.memory_space<vmem>>) attributes {dimension_semantics = [#tpu.dimension_semantics<parallel>, #tpu.dimension_semantics<parallel>, #tpu.dimension_semantics<arbitrary>], iteration_bounds = array<i64: 2, 2, 1>, scalar_prefetch = 0 : i64, scratch_operands = 1 : i64, tpu.core_type = #tpu.core_type<tc>, window_params = [{transform_indices = @transform_0, window_bounds = array<i64: 1, 1, 10, 18, 4>}, {pipeline_mode = #tpu.pipeline_mode<synchronous>, transform_indices = @transform_1, window_bounds = array<i64: 3, 3, 4>}, {transform_indices = @transform_2, window_bounds = array<i64: 4, 128>}, {transform_indices = @transform_3, window_bounds = array<i64: 1, 8, 16, 128>}]} {
    %c0_i32 = arith.constant 0 : i32
    %0 = arith.cmpi eq, %arg2, %c0_i32 : i32
    %1 = arith.extui %0 : i1 to i32
    %c0_i32_0 = arith.constant 0 : i32
    %2 = arith.cmpi ne, %1, %c0_i32_0 : i32
    scf.if %2 {
      %cst_9 = arith.constant 0.000000e+00 : f32
      %9 = vector.broadcast %cst_9 : f32 to vector<8x16x4xf32>
      %c0_10 = arith.constant 0 : index
      %c0_11 = arith.constant 0 : index
      %c0_12 = arith.constant 0 : index
      %c0_13 = arith.constant 0 : index
      %c0_14 = arith.constant 0 : index
      %10 = vector.load %arg3[%c0_10, %c0_11, %c0_12, %c0_13, %c0_14] : memref<1x1x10x18x4xf32, #tpu.memory_space<vmem>>, vector<1x1x8x16x4xf32>
      %11 = vector.shape_cast %10 : vector<1x1x8x16x4xf32> to vector<8x16x4xf32>
      %c0_15 = arith.constant 0 : index
      %c0_16 = arith.constant 0 : index
      %c0_17 = arith.constant 0 : index
      %12 = vector.load %arg4[%c0_15, %c0_16, %c0_17] : memref<3x3x4xf32, #tpu.memory_space<vmem>>, vector<1x1x4xf32>
      %13 = vector.shape_cast %12 : vector<1x1x4xf32> to vector<4xf32>
      %14 = vector.shape_cast %13 : vector<4xf32> to vector<1x1x4xf32>
      %15 = vector.broadcast %14 : vector<1x1x4xf32> to vector<8x16x4xf32>
      %16 = arith.mulf %11, %15 : vector<8x16x4xf32>
      %17 = arith.addf %9, %16 : vector<8x16x4xf32>
      %c0_18 = arith.constant 0 : index
      %c0_19 = arith.constant 0 : index
      %c0_20 = arith.constant 0 : index
      %c1 = arith.constant 1 : index
      %c0_21 = arith.constant 0 : index
      %18 = vector.load %arg3[%c0_18, %c0_19, %c0_20, %c1, %c0_21] : memref<1x1x10x18x4xf32, #tpu.memory_space<vmem>>, vector<1x1x8x16x4xf32>
      %19 = vector.shape_cast %18 : vector<1x1x8x16x4xf32> to vector<8x16x4xf32>
      %c0_22 = arith.constant 0 : index
      %c1_23 = arith.constant 1 : index
      %c0_24 = arith.constant 0 : index
      %20 = vector.load %arg4[%c0_22, %c1_23, %c0_24] : memref<3x3x4xf32, #tpu.memory_space<vmem>>, vector<1x1x4xf32>
      %21 = vector.shape_cast %20 : vector<1x1x4xf32> to vector<4xf32>
      %22 = vector.shape_cast %21 : vector<4xf32> to vector<1x1x4xf32>
      %23 = vector.broadcast %22 : vector<1x1x4xf32> to vector<8x16x4xf32>
      %24 = arith.mulf %19, %23 : vector<8x16x4xf32>
      %25 = arith.addf %17, %24 : vector<8x16x4xf32>
      %c0_25 = arith.constant 0 : index
      %c0_26 = arith.constant 0 : index
      %c0_27 = arith.constant 0 : index
      %c2 = arith.constant 2 : index
      %c0_28 = arith.constant 0 : index
      %26 = vector.load %arg3[%c0_25, %c0_26, %c0_27, %c2, %c0_28] : memref<1x1x10x18x4xf32, #tpu.memory_space<vmem>>, vector<1x1x8x16x4xf32>
      %27 = vector.shape_cast %26 : vector<1x1x8x16x4xf32> to vector<8x16x4xf32>
      %c0_29 = arith.constant 0 : index
      %c2_30 = arith.constant 2 : index
      %c0_31 = arith.constant 0 : index
      %28 = vector.load %arg4[%c0_29, %c2_30, %c0_31] : memref<3x3x4xf32, #tpu.memory_space<vmem>>, vector<1x1x4xf32>
      %29 = vector.shape_cast %28 : vector<1x1x4xf32> to vector<4xf32>
      %30 = vector.shape_cast %29 : vector<4xf32> to vector<1x1x4xf32>
      %31 = vector.broadcast %30 : vector<1x1x4xf32> to vector<8x16x4xf32>
      %32 = arith.mulf %27, %31 : vector<8x16x4xf32>
      %33 = arith.addf %25, %32 : vector<8x16x4xf32>
      %c0_32 = arith.constant 0 : index
      %c0_33 = arith.constant 0 : index
      %c1_34 = arith.constant 1 : index
      %c0_35 = arith.constant 0 : index
      %c0_36 = arith.constant 0 : index
      %34 = vector.load %arg3[%c0_32, %c0_33, %c1_34, %c0_35, %c0_36] : memref<1x1x10x18x4xf32, #tpu.memory_space<vmem>>, vector<1x1x8x16x4xf32>
      %35 = vector.shape_cast %34 : vector<1x1x8x16x4xf32> to vector<8x16x4xf32>
      %c1_37 = arith.constant 1 : index
      %c0_38 = arith.constant 0 : index
      %c0_39 = arith.constant 0 : index
      %36 = vector.load %arg4[%c1_37, %c0_38, %c0_39] : memref<3x3x4xf32, #tpu.memory_space<vmem>>, vector<1x1x4xf32>
      %37 = vector.shape_cast %36 : vector<1x1x4xf32> to vector<4xf32>
      %38 = vector.shape_cast %37 : vector<4xf32> to vector<1x1x4xf32>
      %39 = vector.broadcast %38 : vector<1x1x4xf32> to vector<8x16x4xf32>
      %40 = arith.mulf %35, %39 : vector<8x16x4xf32>
      %41 = arith.addf %33, %40 : vector<8x16x4xf32>
      %c0_40 = arith.constant 0 : index
      %c0_41 = arith.constant 0 : index
      %c1_42 = arith.constant 1 : index
      %c1_43 = arith.constant 1 : index
      %c0_44 = arith.constant 0 : index
      %42 = vector.load %arg3[%c0_40, %c0_41, %c1_42, %c1_43, %c0_44] : memref<1x1x10x18x4xf32, #tpu.memory_space<vmem>>, vector<1x1x8x16x4xf32>
      %43 = vector.shape_cast %42 : vector<1x1x8x16x4xf32> to vector<8x16x4xf32>
      %c1_45 = arith.constant 1 : index
      %c1_46 = arith.constant 1 : index
      %c0_47 = arith.constant 0 : index
      %44 = vector.load %arg4[%c1_45, %c1_46, %c0_47] : memref<3x3x4xf32, #tpu.memory_space<vmem>>, vector<1x1x4xf32>
      %45 = vector.shape_cast %44 : vector<1x1x4xf32> to vector<4xf32>
      %46 = vector.shape_cast %45 : vector<4xf32> to vector<1x1x4xf32>
      %47 = vector.broadcast %46 : vector<1x1x4xf32> to vector<8x16x4xf32>
      %48 = arith.mulf %43, %47 : vector<8x16x4xf32>
      %49 = arith.addf %41, %48 : vector<8x16x4xf32>
      %c0_48 = arith.constant 0 : index
      %c0_49 = arith.constant 0 : index
      %c1_50 = arith.constant 1 : index
      %c2_51 = arith.constant 2 : index
      %c0_52 = arith.constant 0 : index
      %50 = vector.load %arg3[%c0_48, %c0_49, %c1_50, %c2_51, %c0_52] : memref<1x1x10x18x4xf32, #tpu.memory_space<vmem>>, vector<1x1x8x16x4xf32>
      %51 = vector.shape_cast %50 : vector<1x1x8x16x4xf32> to vector<8x16x4xf32>
      %c1_53 = arith.constant 1 : index
      %c2_54 = arith.constant 2 : index
      %c0_55 = arith.constant 0 : index
      %52 = vector.load %arg4[%c1_53, %c2_54, %c0_55] : memref<3x3x4xf32, #tpu.memory_space<vmem>>, vector<1x1x4xf32>
      %53 = vector.shape_cast %52 : vector<1x1x4xf32> to vector<4xf32>
      %54 = vector.shape_cast %53 : vector<4xf32> to vector<1x1x4xf32>
      %55 = vector.broadcast %54 : vector<1x1x4xf32> to vector<8x16x4xf32>
      %56 = arith.mulf %51, %55 : vector<8x16x4xf32>
      %57 = arith.addf %49, %56 : vector<8x16x4xf32>
      %c0_56 = arith.constant 0 : index
      %c0_57 = arith.constant 0 : index
      %c2_58 = arith.constant 2 : index
      %c0_59 = arith.constant 0 : index
      %c0_60 = arith.constant 0 : index
      %58 = vector.load %arg3[%c0_56, %c0_57, %c2_58, %c0_59, %c0_60] : memref<1x1x10x18x4xf32, #tpu.memory_space<vmem>>, vector<1x1x8x16x4xf32>
      %59 = vector.shape_cast %58 : vector<1x1x8x16x4xf32> to vector<8x16x4xf32>
      %c2_61 = arith.constant 2 : index
      %c0_62 = arith.constant 0 : index
      %c0_63 = arith.constant 0 : index
      %60 = vector.load %arg4[%c2_61, %c0_62, %c0_63] : memref<3x3x4xf32, #tpu.memory_space<vmem>>, vector<1x1x4xf32>
      %61 = vector.shape_cast %60 : vector<1x1x4xf32> to vector<4xf32>
      %62 = vector.shape_cast %61 : vector<4xf32> to vector<1x1x4xf32>
      %63 = vector.broadcast %62 : vector<1x1x4xf32> to vector<8x16x4xf32>
      %64 = arith.mulf %59, %63 : vector<8x16x4xf32>
      %65 = arith.addf %57, %64 : vector<8x16x4xf32>
      %c0_64 = arith.constant 0 : index
      %c0_65 = arith.constant 0 : index
      %c2_66 = arith.constant 2 : index
      %c1_67 = arith.constant 1 : index
      %c0_68 = arith.constant 0 : index
      %66 = vector.load %arg3[%c0_64, %c0_65, %c2_66, %c1_67, %c0_68] : memref<1x1x10x18x4xf32, #tpu.memory_space<vmem>>, vector<1x1x8x16x4xf32>
      %67 = vector.shape_cast %66 : vector<1x1x8x16x4xf32> to vector<8x16x4xf32>
      %c2_69 = arith.constant 2 : index
      %c1_70 = arith.constant 1 : index
      %c0_71 = arith.constant 0 : index
      %68 = vector.load %arg4[%c2_69, %c1_70, %c0_71] : memref<3x3x4xf32, #tpu.memory_space<vmem>>, vector<1x1x4xf32>
      %69 = vector.shape_cast %68 : vector<1x1x4xf32> to vector<4xf32>
      %70 = vector.shape_cast %69 : vector<4xf32> to vector<1x1x4xf32>
      %71 = vector.broadcast %70 : vector<1x1x4xf32> to vector<8x16x4xf32>
      %72 = arith.mulf %67, %71 : vector<8x16x4xf32>
      %73 = arith.addf %65, %72 : vector<8x16x4xf32>
      %c0_72 = arith.constant 0 : index
      %c0_73 = arith.constant 0 : index
      %c2_74 = arith.constant 2 : index
      %c2_75 = arith.constant 2 : index
      %c0_76 = arith.constant 0 : index
      %74 = vector.load %arg3[%c0_72, %c0_73, %c2_74, %c2_75, %c0_76] : memref<1x1x10x18x4xf32, #tpu.memory_space<vmem>>, vector<1x1x8x16x4xf32>
      %75 = vector.shape_cast %74 : vector<1x1x8x16x4xf32> to vector<8x16x4xf32>
      %c2_77 = arith.constant 2 : index
      %c2_78 = arith.constant 2 : index
      %c0_79 = arith.constant 0 : index
      %76 = vector.load %arg4[%c2_77, %c2_78, %c0_79] : memref<3x3x4xf32, #tpu.memory_space<vmem>>, vector<1x1x4xf32>
      %77 = vector.shape_cast %76 : vector<1x1x4xf32> to vector<4xf32>
      %78 = vector.shape_cast %77 : vector<4xf32> to vector<1x1x4xf32>
      %79 = vector.broadcast %78 : vector<1x1x4xf32> to vector<8x16x4xf32>
      %80 = arith.mulf %75, %79 : vector<8x16x4xf32>
      %81 = arith.addf %73, %80 : vector<8x16x4xf32>
      %c0_80 = arith.constant 0 : index
      %c0_81 = arith.constant 0 : index
      %c0_82 = arith.constant 0 : index
      %82 = vector.load %arg7[%c0_80, %c0_81, %c0_82] : memref<8x16x4xf32, #tpu.memory_space<vmem>>, vector<8x16x4xf32>
      tpu.vector_store %arg7[%c0_80, %c0_81, %c0_82], %81 {strides = array<i32>} : memref<8x16x4xf32, #tpu.memory_space<vmem>>, vector<8x16x4xf32>,
    } else {
    }
    %c0 = arith.constant 0 : index
    %c0_1 = arith.constant 0 : index
    %c0_2 = arith.constant 0 : index
    %3 = vector.load %arg7[%c0, %c0_1, %c0_2] : memref<8x16x4xf32, #tpu.memory_space<vmem>>, vector<8x16x4xf32>
    %4 = vector.shape_cast %3 : vector<8x16x4xf32> to vector<128x4xf32>
    %c0_3 = arith.constant 0 : index
    %c0_4 = arith.constant 0 : index
    %5 = vector.load %arg5[%c0_3, %c0_4] : memref<4x128xf32, #tpu.memory_space<vmem>>, vector<4x128xf32>
    %cst = arith.constant dense<0.000000e+00> : vector<128x128xf32>
    %6 = tpu.matmul %4, %5, %cst {dimension_numbers = #tpu.dot_dimension_numbers<[1], [0], [0], [1], [0, 0, 1, 1], [], []>} : vector<128x4xf32>, vector<4x128xf32>, vector<128x128xf32> -> vector<128x128xf32>
    %7 = vector.shape_cast %6 : vector<128x128xf32> to vector<1x8x16x128xf32>
    %c0_5 = arith.constant 0 : index
    %c0_6 = arith.constant 0 : index
    %c0_7 = arith.constant 0 : index
    %c0_8 = arith.constant 0 : index
    %8 = vector.load %arg6[%c0_5, %c0_6, %c0_7, %c0_8] : memref<1x8x16x128xf32, #tpu.memory_space<vmem>>, vector<1x8x16x128xf32>
    tpu.vector_store %arg6[%c0_5, %c0_6, %c0_7, %c0_8], %7 {strides = array<i32>} : memref<1x8x16x128xf32, #tpu.memory_space<vmem>>, vector<1x8x16x128xf32>,
    return
  }
  func.func @transform_0(%arg0: i32, %arg1: i32, %arg2: i32) -> (i32, i32, i32, i32, i32) {
    %c0_i32 = arith.constant 0 : i32
    %c0_i32_0 = arith.constant 0 : i32
    %c0_i32_1 = arith.constant 0 : i32
    %c0_i32_2 = arith.constant 0 : i32
    return %arg0, %arg1, %c0_i32, %c0_i32_0, %c0_i32_1 : i32, i32, i32, i32, i32
  }
  func.func @transform_1(%arg0: i32, %arg1: i32, %arg2: i32) -> (i32, i32, i32) {
    %c0_i32 = arith.constant 0 : i32
    %c0_i32_0 = arith.constant 0 : i32
    %c0_i32_1 = arith.constant 0 : i32
    %c0_i32_2 = arith.constant 0 : i32
    return %c0_i32, %c0_i32_0, %c0_i32_1 : i32, i32, i32
  }
  func.func @transform_2(%arg0: i32, %arg1: i32, %arg2: i32) -> (i32, i32) {
    %c0_i32 = arith.constant 0 : i32
    %c0_i32_0 = arith.constant 0 : i32
    return %c0_i32, %arg2 : i32, i32
  }
  func.func @transform_3(%arg0: i32, %arg1: i32, %arg2: i32) -> (i32, i32, i32, i32) {
    %c0_i32 = arith.constant 0 : i32
    %c0_i32_0 = arith.constant 0 : i32
    return %arg0, %arg1, %c0_i32, %arg2 : i32, i32, i32, i32
  }
}

</mosaic_0001>

<bundles_post_ra>
// kernel: separable_conv2d.1
= control target key start
LH: loop header
LB: loop body
LE: loop exit
PB: predicated region body
PF: predicated region fallthrough
CT: control target
= control target key end

     0   :  { %s1390_s12 = smov 0   ;;  %s1392_s13 = smov 0   ;;  %s1969_s0 = inlined_call_operand.vmem [shape: f32[2,2,10,18,4], index: 0, kind: input, shape index: {}]   ;;  %s1970_s1 = inlined_call_operand.vmem [shape: f32[3,3,4], index: 1, kind: input, shape index: {}]   ;;  %s1971_s2 = inlined_call_operand.vmem [shape: f32[4,128], index: 2, kind: input, shape index: {}]   ;;  %s1972_s3 = inlined_call_operand.vmem [shape: f32[2,16,16,128], index: 3, kind: output, shape index: {}]  }
   0x1   :  { %s1394_s14 = smov 0   ;;  %s1396_s15 = smov 0  }
   0x2   :  { %s1398_s16 = smov 0  }
   0x3 LB: > { %s28_s17 = sadd.s32 1, %s1360_s14  ;;  %s32_s18 = sadd.s32 1, %s1364_s15  ;;  %s1368_s16 = sphi %s1398_s16, %s13_s16   ;;  %s1364_s15 = sphi %s1396_s15, %s1976_s15   ;;  %s1360_s14 = sphi %s1394_s14, %s1975_s14   ;;  %s1356_s13 = sphi %s1392_s13, %s1974_s13   ;;  %s1352_s12 = sphi %s1390_s12, %s1973_s12  }
   0x4   : > { %p30_p0 = scmp.ge.s32.totalorder %s28_s17, 2  ;;  %p1107_p1 = scmp.ge.s32.totalorder %s1368_s16, 1 }
   0x5   : > { %p175_p2 = scmp.lt.s32.totalorder %s1368_s16, 5 }
   0x6   : > { %s1978_s17 = smov (%p30_p0, %s28_s17), 0  ;;  %s1980_s18 = smov (!%p30_p0, %s32_s18), %s1364_s15 }
   0x7   : > { %p176_p3 = pnand %p1107_p1, %p175_p2  ;;  %p34_p4 = scmp.ge.s32.totalorder %s1980_s18, 2 }
   0x8   : > { %p215_p5 = scmp.lt.s32.totalorder (!%p176_p3), %s1356_s13, 1  ;;  %p217_p6 = scmp.lt.s32.totalorder (!%p176_p3), %s1352_s12, 1 }
   0x9   : > { %s1982_s18 = smov (%p34_p4, %s1980_s18), 0  ;;  %179 = sbr.rel (%p176_p3) target bundleno = 305 (0x131), region = 32 }
   0xe   : > { %v760_v0 = vld [vmem:[%s1971_s2] sm:$0xf]  ;;  %vm810_vm0 = vcmask 1043456   ;;  %s1984_s13 = smov (!%p215_p5, %s1356_s13), 1  ;;  %v1453_v4 = vld [vmem:[%s1970_s1 + $0x4] ss:$0 sm:$0xff] }
   0xf   : > { %1260 = vmatprep.subr.msk.mxu0 %vm810_vm0, %v760_v0  ;;  %1286 = vmatprep.subr.msk.mxu1 %vm810_vm0, %v760_v0  ;;  %s218_s21 = scalar_select %p217_p6, %s1352_s12, 1  ;;  %v1433_v1 = vld [vmem:[%s1970_s1] ss:$0 sm:$0xff]  ;;  %v1438_v2 = vld [vmem:[%s1970_s1 + $0x1] ss:$0 sm:$0xff]  ;;  %vm727_vm1 = vcmask 31744  }
  0x10   : > { %1261 = vmatpush3.msk.msra.mxu0 %vm810_vm0, %v760_v0  ;;  %1287 = vmatpush3.msk.msra.mxu1 %vm810_vm0, %v760_v0  ;;  %s1289_s22 = smul.u32 60, %s1984_s13  ;;  %v1443_v3 = vld [vmem:[%s1970_s1 + $0x2] ss:$0 sm:$0xff]  ;;  %v1458_v5 = vld [vmem:[%s1970_s1 + $0x5] ss:$0 sm:$0xff]  ;;  %s1111_s29 = sshll.u32 %s1984_s13, 5 }
  0x11   : > { %s1288_s23 = smul.u32 30, %s218_s21  ;;  %v1463_v6 = vld [vmem:[%s1970_s1 + $0x6] ss:$0 sm:$0xff]  ;;  %v1471_v10 = vld [vmem:[%s1970_s1 + $0x8] ss:$0 sm:$0xff] }
  0x12   : > { %v1480_v15 = vld [vmem:[%s1970_s1 + $0x9] ss:$0 sm:$0xff]  ;;  %v1485_v16 = vld [vmem:[%s1970_s1 + $0xa] ss:$0 sm:$0xff] }
  0x13   : > { %s221_s24 = sadd.s32 %s1289_s22, %s1288_s23 }
  0x14   : > { %s1108_s27 = sshll.u32 %s221_s24, 3 }
  0x15   : > { %s1448_s7 = scalar_lea.vmem %s1969_s0, %s1108_s27  ;;  %s1109_s27 = sshll.u32 %s1352_s12, 3 }
  0x16   : > { %v246_v7 = vld [vmem:[%s1448_s7] sm:$0xff]  ;;  %v1116_v14 = vld [vmem:[%s1448_s7 + $0x18] sm:$0xff]  ;;  %v1492_v19 = vld [vmem:[%s1448_s7 + $0x30] sm:$0xff]  ;;  %p231_p7 = scmp.lt.s32.totalorder %s1109_s27, 15 }
  0x17   : > { %v299_v8 = vld [vmem:[%s1448_s7 + $0x1] sm:$0xff]  ;;  %v267_v11 = vmul.f32 %v1433_v1, %v246_v7  ;;  %v1134_v17 = vld [vmem:[%s1448_s7 + $0x19] sm:$0xff]  ;;  %v428_v21 = vmul.f32 %v1453_v4, %v1116_v14  ;;  %v1508_v27 = vld [vmem:[%s1448_s7 + $0x31] sm:$0xff]  ;;  %v269_v33 = vmul.f32 %v1116_v14, %v1433_v1  ;;  %v589_v35 = vmul.f32 %v1471_v10, %v1492_v19 }
  0x18   : > { %v352_v9 = vld [vmem:[%s1448_s7 + $0x2] sm:$0xff]  ;;  %v320_v12 = vmul.f32 %v1438_v2, %v299_v8  ;;  %v1489_v18 = vld [vmem:[%s1448_s7 + $0x1a] sm:$0xff]  ;;  %v481_v22 = vmul.f32 %v1458_v5, %v1134_v17  ;;  %v1511_v28 = vld [vmem:[%s1448_s7 + $0x32] sm:$0xff]  ;;  %v642_v36 = vmul.f32 %v1480_v15, %v1508_v27  ;;  %v322_v46 = vmul.f32 %v1134_v17, %v1438_v2  ;;  %s1986_s27 = smov (!%p231_p7, %s1109_s27), 15 }
  0x19   : > { %v373_v13 = vmul.f32 %v1443_v3, %v352_v9  ;;  %v534_v23 = vmul.f32 %v1463_v6, %v1489_v18  ;;  %v1499_v24 = vld [vmem:[%s1448_s7 + $0x60] sm:$0xff]  ;;  %v1520_v32 = vld [vmem:[%s1448_s7 + $0x78] sm:$0xff]  ;;  %v1529_v37 = vmul.f32 %v1485_v16, %v1511_v28  ;;  %v247_v43 = vld [vmem:[%s1448_s7 + $0x8] sm:$0xff]  ;;  %s1110_s28 = sshll.u32 %s1986_s27, 1 }
  0x1a   : > { %v336_v20 = vadd.f32 %v320_v12, %v267_v11  ;;  %v1502_v25 = vld [vmem:[%s1448_s7 + $0x61] sm:$0xff]  ;;  %v275_v29 = vmul.f32 %v1433_v1, %v1499_v24  ;;  %v1532_v38 = vld [vmem:[%s1448_s7 + $0x79] sm:$0xff]  ;;  %v436_v41 = vmul.f32 %v1453_v4, %v1520_v32  ;;  %v300_v44 = vld [vmem:[%s1448_s7 + $0x9] sm:$0xff]  ;;  %v268_v50 = vmul.f32 %v1433_v1, %v247_v43  ;;  %s238_s30 = sadd.s32 %s1111_s29, %s1110_s28 }
  0x1b   : > { %v1505_v26 = vld [vmem:[%s1448_s7 + $0x62] sm:$0xff]  ;;  %v328_v30 = vmul.f32 %v1438_v2, %v1502_v25  ;;  %v1535_v39 = vld [vmem:[%s1448_s7 + $0x7a] sm:$0xff]  ;;  %v489_v42 = vmul.f32 %v1458_v5, %v1532_v38  ;;  %v353_v45 = vld [vmem:[%s1448_s7 + $0xa] sm:$0xff]  ;;  %v321_v51 = vmul.f32 %v1438_v2, %v300_v44  ;;  %s1112_s4 = sshll.u32 %s238_s30, 3 }
  0x1c   : > { %v381_v31 = vmul.f32 %v1443_v3, %v1505_v26  ;;  %v389_v34 = vadd.f32 %v373_v13, %v336_v20  ;;  %v1546_v48 = vld [vmem:[%s1448_s7 + $0x90] sm:$0xff]  ;;  %v374_v52 = vmul.f32 %v1443_v3, %v353_v45  ;;  %v1555_v53 = vld [vmem:[%s1448_s7 + $0x20] sm:$0xff]  ;;  %v542_v55 = vmul.f32 %v1463_v6, %v1535_v39  ;;  %v1574_v0 = vld [vmem:[%s1448_s7 + $0x68] sm:$0xff] }
  0x1d   : > { %v344_v40 = vadd.f32 %v328_v30, %v275_v29  ;;  %v1549_v49 = vld [vmem:[%s1448_s7 + $0x91] sm:$0xff]  ;;  %v597_v56 = vmul.f32 %v1471_v10, %v1546_v48  ;;  %v1567_v59 = vld [vmem:[%s1448_s7 + $0x21] sm:$0xff]  ;;  %v337_v62 = vadd.f32 %v321_v51, %v268_v50  ;;  %v429_v63 = vmul.f32 %v1453_v4, %v1555_v53  ;;  %v1577_v7 = vld [vmem:[%s1448_s7 + $0x69] sm:$0xff] }
  0x1e   : > { %v444_v47 = vadd.f32 %v428_v21, %v389_v34  ;;  %v650_v57 = vmul.f32 %v1480_v15, %v1549_v49  ;;  %v1564_v58 = vld [vmem:[%s1448_s7 + $0x92] sm:$0xff]  ;;  %v1580_v8 = vld [vmem:[%s1448_s7 + $0x6a] sm:$0xff]  ;;  %v482_v11 = vmul.f32 %v1458_v5, %v1567_v59  ;;  %v1585_v12 = vld [vmem:[%s1448_s7 + $0x22] sm:$0xff]  ;;  %v276_v13 = vmul.f32 %v1433_v1, %v1574_v0 }
  0x1f   : > { %v397_v54 = vadd.f32 %v381_v31, %v344_v40  ;;  %v703_v61 = vmul.f32 %v1485_v16, %v1564_v58  ;;  %v329_v14 = vmul.f32 %v1438_v2, %v1577_v7  ;;  %v1592_v17 = vld [vmem:[%s1448_s7 + $0x80] sm:$0xff]  ;;  %v390_v21 = vadd.f32 %v374_v52, %v337_v62  ;;  %v1597_v29 = vld [vmem:[%s1448_s7 + $0x38] sm:$0xff] }
  0x20   : > { %v497_v60 = vadd.f32 %v481_v22, %v444_v47  ;;  %v535_v22 = vmul.f32 %v1463_v6, %v1585_v12  ;;  %v382_v30 = vmul.f32 %v1443_v3, %v1580_v8  ;;  %v590_v34 = vmul.f32 %v1471_v10, %v1597_v29  ;;  %v1604_v40 = vld [vmem:[%s1448_s7 + $0x39] sm:$0xff]  ;;  %v1616_v50 = vld [vmem:[%s1448_s7 + $0x81] sm:$0xff] }
  0x21   : > { %v452_v9 = vadd.f32 %v436_v41, %v397_v54  ;;  %v1607_v41 = vld [vmem:[%s1448_s7 + $0x3a] sm:$0xff]  ;;  %v437_v43 = vmul.f32 %v1453_v4, %v1592_v17  ;;  %v445_v45 = vadd.f32 %v429_v63, %v390_v21  ;;  %v643_v47 = vmul.f32 %v1480_v15, %v1604_v40 }
  0x22   : > { %v550_v20 = vadd.f32 %v534_v23, %v497_v60  ;;  %v345_v23 = vadd.f32 %v329_v14, %v276_v13  ;;  %v490_v54 = vmul.f32 %v1458_v5, %v1616_v50  ;;  %v338_v60 = vadd.f32 %v322_v46, %v269_v33  ;;  %v1621_v13 = vld [vmem:[%s1448_s7 + $0x82] sm:$0xff] }
  0x23   : > { %v505_v31 = vadd.f32 %v489_v42, %v452_v9  ;;  %v696_v42 = vmul.f32 %v1485_v16, %v1607_v41  ;;  %v498_v9 = vadd.f32 %v482_v11, %v445_v45  ;;  %v375_v63 = vmul.f32 %v1489_v18, %v1443_v3  ;;  %v1636_v11 = vld [vmem:[%s1448_s7 + $0x99] sm:$0xff] }
  0x24   : > { %v605_v44 = vadd.f32 %v589_v35, %v550_v20  ;;  %v398_v52 = vadd.f32 %v382_v30, %v345_v23  ;;  %v1624_v35 = vld [vmem:[%s1448_s7 + $0x98] sm:$0xff]  ;;  %v430_v14 = vmul.f32 %v1492_v19, %v1453_v4  ;;  %v543_v21 = vmul.f32 %v1463_v6, %v1621_v13 }
  0x25   : > { %v558_v51 = vadd.f32 %v542_v55, %v505_v31  ;;  %v598_v33 = vmul.f32 %v1471_v10, %v1624_v35  ;;  %v551_v46 = vadd.f32 %v535_v22, %v498_v9  ;;  %v391_v30 = vadd.f32 %v375_v63, %v338_v60  ;;  %v1660_v63 = vld [vmem:[%s1448_s7 + $0x49] sm:$0xff] }
  0x26   : > { %v658_v62 = vadd.f32 %v642_v36, %v605_v44  ;;  %v453_v55 = vadd.f32 %v437_v43, %v398_v52  ;;  %v483_v18 = vmul.f32 %v1508_v27, %v1458_v5  ;;  %v651_v23 = vmul.f32 %v1480_v15, %v1636_v11  ;;  %v1646_v44 = vld [vmem:[%s1448_s7 + $0x48] sm:$0xff] }
  0x27   : > { %v613_v20 = vadd.f32 %v597_v56, %v558_v51  ;;  %v536_v43 = vmul.f32 %v1511_v28, %v1463_v6  ;;  %v446_v22 = vadd.f32 %v430_v14, %v391_v30  ;;  %v277_v45 = vmul.f32 %v1520_v32, %v1433_v1 }
  0x28   : > { %v711_v36 = vadd.f32 %v1529_v37, %v658_v62  ;;  %v506_v56 = vadd.f32 %v490_v54, %v453_v55  ;;  %v606_v37 = vadd.f32 %v590_v34, %v551_v46  ;;  %v591_v54 = vmul.f32 %v1471_v10, %v1646_v44  ;;  %v1657_v34 = vld [vmem:[%s1448_s7 + $0x9a] sm:$0xff] }
  0x29   : > { %v666_v31 = vadd.f32 %v650_v57, %v613_v20  ;;  %v330_v57 = vmul.f32 %v1532_v38, %v1438_v2  ;;  %v383_v60 = vmul.f32 %v1535_v39, %v1443_v3  ;;  %v499_v9 = vadd.f32 %v483_v18, %v446_v22 }
  0x2a   : > { %728 = vst.msk [vmem:[#allocation2] sm:$0xff] %vm727_vm1, %v711_v36  ;;  %v559_v52 = vadd.f32 %v543_v21, %v506_v56  ;;  %v659_v62 = vadd.f32 %v643_v47, %v606_v37  ;;  %v438_v20 = vmul.f32 %v1546_v48, %v1453_v4  ;;  %v704_v55 = vmul.f32 %v1485_v16, %v1657_v34 }
  0x2b   : > { %v719_v51 = vadd.f32 %v703_v61, %v666_v31  ;;  %v346_v14 = vadd.f32 %v330_v57, %v277_v45  ;;  %v644_v21 = vmul.f32 %v1480_v15, %v1660_v63  ;;  %v552_v47 = vadd.f32 %v536_v43, %v499_v9  ;;  %v1672_v31 = vld [vmem:[%s1448_s7 + $0x4a] sm:$0xff] }
  0x2c   : > { %v614_v61 = vadd.f32 %v598_v33, %v559_v52  ;;  %v712_v36 = vadd.f32 %v696_v42, %v659_v62  ;;  %v491_v30 = vmul.f32 %v1549_v49, %v1458_v5  ;;  %v270_v56 = vmul.f32 %v1555_v53, %v1433_v1  ;;  %v1686_v57 = vld [vmem:[%s1448_s7 + $0xa8] sm:$0xff] }
  0x2d   : > { %736 = vst.msk [vmem:[#allocation2 + $0x40] sm:$0xff] %vm727_vm1, %v719_v51  ;;  %v399_v46 = vadd.f32 %v383_v60, %v346_v14  ;;  %v323_v33 = vmul.f32 %v1567_v59, %v1438_v2  ;;  %v376_v37 = vmul.f32 %v1585_v12, %v1443_v3  ;;  %v607_v42 = vadd.f32 %v591_v54, %v552_v47  ;;  %v1697_v62 = vld [vmem:[%s1448_s7 + $0xa9] sm:$0xff] }
  0x2e   : > { %v667_v18 = vadd.f32 %v651_v23, %v614_v61  ;;  %729 = vst.msk [vmem:[#allocation2 + $0x8] sm:$0xff] %vm727_vm1, %v712_v36  ;;  %v697_v43 = vmul.f32 %v1485_v16, %v1672_v31  ;;  %v544_v22 = vmul.f32 %v1564_v58, %v1463_v6  ;;  %v431_v12 = vmul.f32 %v1597_v29, %v1453_v4  ;;  %v1700_v9 = vld [vmem:[%s1448_s7 + $0xaa] sm:$0xff] }
  0x2f   : > { %v454_v23 = vadd.f32 %v438_v20, %v399_v46  ;;  %v339_v59 = vadd.f32 %v323_v33, %v270_v56  ;;  %v660_v51 = vadd.f32 %v644_v21, %v607_v42  ;;  %v599_v54 = vmul.f32 %v1471_v10, %v1686_v57  ;;  %v1716_v33 = vld [vmem:[%s1448_s7 + $0x50] sm:$0xff] }
  0x30   : > { %v720_v53 = vadd.f32 %v704_v55, %v667_v18  ;;  %v484_v60 = vmul.f32 %v1604_v40, %v1458_v5  ;;  %v278_v20 = vmul.f32 %v1592_v17, %v1433_v1  ;;  %v331_v61 = vmul.f32 %v1616_v50, %v1438_v2 }
  0x31   : > { %v744_v45 = vld [vmem:[#allocation2] sm:$0xff]  ;;  %v507_v52 = vadd.f32 %v491_v30, %v454_v23  ;;  %v392_v14 = vadd.f32 %v376_v37, %v339_v59  ;;  %v384_v55 = vmul.f32 %v1621_v13, %v1443_v3  ;;  %v713_v36 = vadd.f32 %v697_v43, %v660_v51  ;;  %v1731_v51 = vld [vmem:[%s1448_s7 + $0x52] sm:$0xff] }
  0x32   : > { %1262 = vmatprep.mubr.msk.f32.mxu0 %vm727_vm1, %v744_v45  ;;  %737 = vst.msk [vmem:[#allocation2 + $0x48] sm:$0xff] %vm727_vm1, %v720_v53  ;;  %v652_v46 = vmul.f32 %v1480_v15, %v1697_v62  ;;  %v705_v30 = vmul.f32 %v1485_v16, %v1700_v9  ;;  %v537_v56 = vmul.f32 %v1607_v41, %v1463_v6 }
  0x33   : > { %v560_v47 = vadd.f32 %v544_v22, %v507_v52  ;;  %v447_v18 = vadd.f32 %v431_v12, %v392_v14  ;;  %v347_v37 = vadd.f32 %v331_v61, %v278_v20  ;;  %v439_v42 = vmul.f32 %v1624_v35, %v1453_v4  ;;  %730 = vst.msk [vmem:[#allocation2 + $0x10] sm:$0xff] %vm727_vm1, %v713_v36  ;;  %v1728_v12 = vld [vmem:[%s1448_s7 + $0x51] sm:$0xff] }
  0x34   : > { %v752_v21 = vld [vmem:[#allocation2 + $0x40] sm:$0xff]  ;;  %v592_v23 = vmul.f32 %v1471_v10, %v1716_v33  ;;  %v492_v22 = vmul.f32 %v1636_v11, %v1458_v5  ;;  %v271_v45 = vmul.f32 %v1492_v19, %v1433_v1  ;;  %v377_v14 = vmul.f32 %v1511_v28, %v1443_v3  ;;  %v1745_v36 = vld [vmem:[%s1448_s7 + $0xb0] sm:$0xff] }
  0x35   : > { %1274 = vmatprep.mubr.msk.f32.mxu1 %vm727_vm1, %v752_v21  ;;  %v615_v43 = vadd.f32 %v599_v54, %v560_v47  ;;  %v745_v53 = vld [vmem:[#allocation2 + $0x8] sm:$0xff]  ;;  %v500_v59 = vadd.f32 %v484_v60, %v447_v18  ;;  %v400_v52 = vadd.f32 %v384_v55, %v347_v37  ;;  %v324_v54 = vmul.f32 %v1508_v27, %v1438_v2 }
  0x36   : > { %1263 = vmatmul.mubr.msk.f32.vlgmr.msra.gmra.mxu0 %vm727_vm1, %v745_v53  ;;  %v645_v61 = vmul.f32 %v1480_v15, %v1728_v12  ;;  %v698_v19 = vmul.f32 %v1485_v16, %v1731_v51  ;;  %v545_v60 = vmul.f32 %v1657_v34, %v1463_v6  ;;  %v432_v28 = vmul.f32 %v1646_v44, %v1453_v4 }
  0x37   : > { %v668_v20 = vadd.f32 %v652_v46, %v615_v43  ;;  %v553_v55 = vadd.f32 %v537_v56, %v500_v59  ;;  %v455_v21 = vadd.f32 %v439_v42, %v400_v52  ;;  %v340_v27 = vadd.f32 %v324_v54, %v271_v45  ;;  %v1757_v45 = vld [vmem:[%s1448_s7 + $0xb1] sm:$0xff] }
  0x38   : > { %v600_v18 = vmul.f32 %v1471_v10, %v1745_v36  ;;  %v485_v37 = vmul.f32 %v1660_v63, %v1458_v5  ;;  %v279_v43 = vmul.f32 %v1546_v48, %v1433_v1  ;;  %v653_v59 = vmul.f32 %v1480_v15, %v1757_v45 }
  0x39   : > { %v753_v47 = vld [vmem:[#allocation2 + $0x48] sm:$0xff]  ;;  %v721_v46 = vadd.f32 %v705_v30, %v668_v20  ;;  %v608_v56 = vadd.f32 %v592_v23, %v553_v55  ;;  %v508_v42 = vadd.f32 %v492_v22, %v455_v21  ;;  %v393_v53 = vadd.f32 %v377_v14, %v340_v27  ;;  %v1771_v20 = vld [vmem:[%s1448_s7 + $0xb2] sm:$0xff] }
  0x3a   : > { %1275 = vmatmul.mubr.msk.f32.vlgmr.msra.gmra.mxu1 %vm727_vm1, %v753_v47  ;;  %v332_v30 = vmul.f32 %v1549_v49, %v1438_v2  ;;  %v538_v52 = vmul.f32 %v1672_v31, %v1463_v6  ;;  %v385_v48 = vmul.f32 %v1564_v58, %v1443_v3  ;;  %v440_v23 = vmul.f32 %v1686_v57, %v1453_v4  ;;  %v746_v22 = vld [vmem:[#allocation2 + $0x10] sm:$0xff] }
  0x3b   : > { %738 = vst.msk [vmem:[#allocation2 + $0x50] sm:$0xff] %vm727_vm1, %v721_v46  ;;  %v661_v54 = vadd.f32 %v645_v61, %v608_v56  ;;  %v561_v14 = vadd.f32 %v545_v60, %v508_v42  ;;  %v448_v49 = vadd.f32 %v432_v28, %v393_v53  ;;  %1265 = vmatprep.mubr.msk.f32.mxu0 %vm727_vm1, %v746_v22 }
  0x3c   : > { %v348_v55 = vadd.f32 %v332_v30, %v279_v43  ;;  %v706_v21 = vmul.f32 %v1485_v16, %v1771_v20  ;;  %v593_v27 = vmul.f32 %v1471_v10, %v1499_v24  ;;  %v493_v58 = vmul.f32 %v1697_v62, %v1458_v5 }
  0x3d   : > { %v272_v61 = vmul.f32 %v1597_v29, %v1433_v1  ;;  %v714_v60 = vadd.f32 %v698_v19, %v661_v54  ;;  %v616_v47 = vadd.f32 %v600_v18, %v561_v14  ;;  %v501_v28 = vadd.f32 %v485_v37, %v448_v49  ;;  %v1182_v37 = vld [vmem:[%s1448_s7 + $0xc0] sm:$0xff] }
  0x3e   : > { %v401_v46 = vadd.f32 %v385_v48, %v348_v55  ;;  %v646_v43 = vmul.f32 %v1480_v15, %v1502_v25  ;;  %v699_v56 = vmul.f32 %v1485_v16, %v1505_v26  ;;  %v325_v42 = vmul.f32 %v1604_v40, %v1438_v2  ;;  %v1795_v48 = vld [vmem:[%s1448_s7 + $0xc1] sm:$0xff] }
  0x3f   : > { %v378_v53 = vmul.f32 %v1607_v41, %v1443_v3  ;;  %731 = vst.msk [vmem:[#allocation2 + $0x18] sm:$0xff] %vm727_vm1, %v714_v60  ;;  %v669_v30 = vadd.f32 %v653_v59, %v616_v47  ;;  %v554_v29 = vadd.f32 %v538_v52, %v501_v28  ;;  %v546_v18 = vmul.f32 %v1700_v9, %v1463_v6  ;;  %v1806_v55 = vld [vmem:[%s1448_s7 + $0xc2] sm:$0xff] }
  0x40   : > { %v456_v19 = vadd.f32 %v440_v23, %v401_v46  ;;  %v601_v22 = vmul.f32 %v1471_v10, %v1182_v37  ;;  %v654_v40 = vmul.f32 %v1480_v15, %v1795_v48  ;;  %v341_v54 = vadd.f32 %v325_v42, %v272_v61 }
  0x41   : > { %v433_v41 = vmul.f32 %v1716_v33, %v1453_v4  ;;  %v722_v59 = vadd.f32 %v706_v21, %v669_v30  ;;  %v609_v49 = vadd.f32 %v593_v27, %v554_v29  ;;  %v280_v23 = vmul.f32 %v1624_v35, %v1433_v1 }
  0x42   : > { %v754_v14 = vld [vmem:[#allocation2 + $0x50] sm:$0xff]  ;;  %v509_v52 = vadd.f32 %v493_v58, %v456_v19  ;;  %v394_v60 = vadd.f32 %v378_v53, %v341_v54  ;;  %v486_v47 = vmul.f32 %v1728_v12, %v1458_v5  ;;  %v333_v61 = vmul.f32 %v1636_v11, %v1438_v2 }
  0x43   : > { %1277 = vmatprep.mubr.msk.f32.mxu1 %vm727_vm1, %v754_v14  ;;  %v386_v28 = vmul.f32 %v1657_v34, %v1443_v3  ;;  %739 = vst.msk [vmem:[#allocation2 + $0x58] sm:$0xff] %vm727_vm1, %v722_v59  ;;  %v662_v21 = vadd.f32 %v646_v43, %v609_v49  ;;  %v707_v35 = vmul.f32 %v1485_v16, %v1806_v55 }
  0x44   : > { %v562_v27 = vadd.f32 %v546_v18, %v509_v52  ;;  %v539_v58 = vmul.f32 %v1731_v51, %v1463_v6  ;;  %v449_v46 = vadd.f32 %v433_v41, %v394_v60  ;;  %v594_v42 = vmul.f32 %v1471_v10, %v1574_v0  ;;  %v1840_v52 = vld [vmem:[%s1448_s7 + $0xc8] sm:$0xff] }
  0x45   : > { %v349_v53 = vadd.f32 %v333_v61, %v280_v23  ;;  %v441_v11 = vmul.f32 %v1745_v36, %v1453_v4  ;;  %v715_v30 = vadd.f32 %v699_v56, %v662_v21  ;;  %v494_v43 = vmul.f32 %v1757_v45, %v1458_v5 }
  0x46   : > { %v617_v34 = vadd.f32 %v601_v22, %v562_v27  ;;  %v273_v29 = vmul.f32 %v1646_v44, %v1433_v1  ;;  %v747_v19 = vld [vmem:[#allocation2 + $0x18] sm:$0xff]  ;;  %v502_v18 = vadd.f32 %v486_v47, %v449_v46  ;;  %v326_v41 = vmul.f32 %v1660_v63, %v1438_v2 }
  0x47   : > { %v402_v54 = vadd.f32 %v386_v28, %v349_v53  ;;  %v379_v14 = vmul.f32 %v1672_v31, %v1443_v3  ;;  %1266 = vmatmul.mubr.msk.f32.gmra.mxu0 %vm727_vm1, %v747_v19  ;;  %732 = vst.msk [vmem:[#allocation2 + $0x20] sm:$0xff] %vm727_vm1, %v715_v30  ;;  %v647_v22 = vmul.f32 %v1480_v15, %v1577_v7  ;;  %v1219_v30 = vld [vmem:[%s1448_s7 + $0xca] sm:$0xff] }
  0x48   : > { %v670_v56 = vadd.f32 %v654_v40, %v617_v34  ;;  %v700_v44 = vmul.f32 %v1485_v16, %v1580_v8  ;;  %v547_v59 = vmul.f32 %v1771_v20, %v1463_v6  ;;  %v555_v49 = vadd.f32 %v539_v58, %v502_v18  ;;  %v1851_v58 = vld [vmem:[%s1448_s7 + $0xc9] sm:$0xff] }
  0x49   : > { %v457_v63 = vadd.f32 %v441_v11, %v402_v54  ;;  %v342_v31 = vadd.f32 %v326_v41, %v273_v29  ;;  %v434_v23 = vmul.f32 %v1453_v4, %v1499_v24  ;;  %v602_v40 = vmul.f32 %v1471_v10, %v1840_v52 }
  0x4a   : > { %v723_v60 = vadd.f32 %v707_v35, %v670_v56  ;;  %v487_v47 = vmul.f32 %v1458_v5, %v1502_v25  ;;  %v281_v61 = vmul.f32 %v1686_v57, %v1433_v1  ;;  %v755_v28 = vld [vmem:[#allocation2 + $0x58] sm:$0xff]  ;;  %v610_v21 = vadd.f32 %v594_v42, %v555_v49 }
  0x4b   : > { %v510_v27 = vadd.f32 %v494_v43, %v457_v63  ;;  %v395_v46 = vadd.f32 %v379_v14, %v342_v31  ;;  %v334_v24 = vmul.f32 %v1697_v62, %v1438_v2  ;;  %1278 = vmatmul.mubr.msk.f32.gmra.mxu1 %vm727_vm1, %v755_v28  ;;  %v655_v25 = vmul.f32 %v1480_v15, %v1851_v58  ;;  %v1184_v14 = vld [vmem:[%s1448_s7 + $0xd8] sm:$0xff] }
  0x4c   : > { %740 = vst.msk [vmem:[#allocation2 + $0x60] sm:$0xff] %vm727_vm1, %v723_v60  ;;  %v540_v35 = vmul.f32 %v1463_v6, %v1505_v26  ;;  %v387_v57 = vmul.f32 %v1700_v9, %v1443_v3  ;;  %v442_v42 = vmul.f32 %v1182_v37, %v1453_v4  ;;  %v663_v53 = vadd.f32 %v647_v22, %v610_v21  ;;  %v1202_v63 = vld [vmem:[%s1448_s7 + $0xd9] sm:$0xff] }
  0x4d   : > { %v563_v11 = vadd.f32 %v547_v59, %v510_v27  ;;  %v450_v62 = vadd.f32 %v434_v23, %v395_v46  ;;  %v350_v34 = vadd.f32 %v334_v24, %v281_v61  ;;  %v708_v43 = vmul.f32 %v1485_v16, %v1219_v30 }
  0x4e   : > { %v595_v29 = vmul.f32 %v1471_v10, %v1520_v32  ;;  %v495_v19 = vmul.f32 %v1795_v48, %v1458_v5  ;;  %v274_v26 = vmul.f32 %v1716_v33, %v1433_v1  ;;  %v748_v9 = vld [vmem:[#allocation2 + $0x20] sm:$0xff]  ;;  %v716_v18 = vadd.f32 %v700_v44, %v663_v53 }
  0x4f   : > { %v618_v37 = vadd.f32 %v602_v40, %v563_v11  ;;  %v503_v54 = vadd.f32 %v487_v47, %v450_v62  ;;  %v403_v41 = vadd.f32 %v387_v57, %v350_v34  ;;  %1268 = vmatprep.mubr.msk.f32.mxu0 %vm727_vm1, %v748_v9  ;;  %v648_v56 = vmul.f32 %v1480_v15, %v1532_v38 }
  0x50   : > { %v327_v32 = vmul.f32 %v1728_v12, %v1438_v2  ;;  %v380_v48 = vmul.f32 %v1731_v51, %v1443_v3  ;;  %733 = vst.msk [vmem:[#allocation2 + $0x28] sm:$0xff] %vm727_vm1, %v716_v18  ;;  %v548_v59 = vmul.f32 %v1806_v55, %v1463_v6  ;;  %v701_v49 = vmul.f32 %v1485_v16, %v1535_v39  ;;  %v1220_v55 = vld [vmem:[%s1448_s7 + $0xda] sm:$0xff] }
  0x51   : > { %v671_v33 = vadd.f32 %v655_v25, %v618_v37  ;;  %v556_v22 = vadd.f32 %v540_v35, %v503_v54  ;;  %v458_v44 = vadd.f32 %v442_v42, %v403_v41  ;;  %v603_v38 = vmul.f32 %v1471_v10, %v1184_v14 }
  0x52   : > { %v343_v31 = vadd.f32 %v327_v32, %v274_v26  ;;  %v435_v12 = vmul.f32 %v1453_v4, %v1574_v0  ;;  %v282_v47 = vmul.f32 %v1745_v36, %v1433_v1  ;;  %v488_v39 = vmul.f32 %v1458_v5, %v1577_v7  ;;  %v1221_v26 = vld [vmem:[%s1448_s7 + $0xe2] sm:$0xff] }
  0x53   : > { %v756_v51 = vld [vmem:[#allocation2 + $0x60] sm:$0xff]  ;;  %v724_v23 = vadd.f32 %v708_v43, %v671_v33  ;;  %v611_v60 = vadd.f32 %v595_v29, %v556_v22  ;;  %v511_v40 = vadd.f32 %v495_v19, %v458_v44  ;;  %v335_v28 = vmul.f32 %v1757_v45, %v1438_v2 }
  0x54   : > { %1280 = vmatprep.mubr.msk.f32.mxu1 %vm727_vm1, %v756_v51  ;;  %v396_v61 = vadd.f32 %v380_v48, %v343_v31  ;;  %v388_v0 = vmul.f32 %v1771_v20, %v1443_v3  ;;  %v656_v46 = vmul.f32 %v1480_v15, %v1202_v63  ;;  %v541_v36 = vmul.f32 %v1463_v6, %v1580_v8  ;;  %v1185_v8 = vld [vmem:[%s1448_s7 + $0xe0] sm:$0xff] }
  0x55   : > { %741 = vst.msk [vmem:[#allocation2 + $0x68] sm:$0xff] %vm727_vm1, %v724_v23  ;;  %v664_v21 = vadd.f32 %v648_v56, %v611_v60  ;;  %v564_v27 = vadd.f32 %v548_v59, %v511_v40  ;;  %v351_v24 = vadd.f32 %v335_v28, %v282_v47  ;;  %v443_v7 = vmul.f32 %v1840_v52, %v1453_v4 }
  0x56   : > { %v451_v1 = vadd.f32 %v435_v12, %v396_v61  ;;  %v709_v3 = vmul.f32 %v1485_v16, %v1220_v55  ;;  %v596_v35 = vmul.f32 %v1471_v10, %v1592_v17  ;;  %v496_v42 = vmul.f32 %v1851_v58, %v1458_v5  ;;  %v1203_v17 = vld [vmem:[%s1448_s7 + $0xe1] sm:$0xff]  ;;  %s1936_s7 = scalar_lea.vmem %s1972_s3, %s1112_s4 }
  0x57   : > { %v717_v25 = vadd.f32 %v701_v49, %v664_v21  ;;  %v619_v2 = vadd.f32 %v603_v38, %v564_v27  ;;  %v749_v45 = vld [vmem:[#allocation2 + $0x28] sm:$0xff]  ;;  %v404_v57 = vadd.f32 %v388_v0, %v351_v24  ;;  %v649_v53 = vmul.f32 %v1480_v15, %v1616_v50 }
  0x58   : > { %v504_v20 = vadd.f32 %v488_v39, %v451_v1  ;;  %1269 = vmatmul.mubr.msk.f32.gmra.mxu0 %vm727_vm1, %v749_v45  ;;  %v549_v62 = vmul.f32 %v1219_v30, %v1463_v6  ;;  %v702_v5 = vmul.f32 %v1485_v16, %v1621_v13  ;;  %v604_v19 = vmul.f32 %v1471_v10, %v1185_v8 }
  0x59   : > { %734 = vst.msk [vmem:[#allocation2 + $0x30] sm:$0xff] %vm727_vm1, %v717_v25  ;;  %v672_v4 = vadd.f32 %v656_v46, %v619_v2  ;;  %v459_v11 = vadd.f32 %v443_v7, %v404_v57  ;;  %v657_v18 = vmul.f32 %v1480_v15, %v1203_v17  ;;  %v710_v54 = vmul.f32 %v1485_v16, %v1221_v26 }
  0x5a   : > { %v557_v52 = vadd.f32 %v541_v36, %v504_v20 }
  0x5b   : > { %v725_v34 = vadd.f32 %v709_v3, %v672_v4  ;;  %v512_v58 = vadd.f32 %v496_v42, %v459_v11 }
  0x5c   : > { %v757_v43 = vld [vmem:[#allocation2 + $0x68] sm:$0xff]  ;;  %v612_v29 = vadd.f32 %v596_v35, %v557_v52 }
  0x5d   : > { %1281 = vmatmul.mubr.msk.f32.gmra.mxu1 %vm727_vm1, %v757_v43  ;;  %742 = vst.msk [vmem:[#allocation2 + $0x70] sm:$0xff] %vm727_vm1, %v725_v34  ;;  %v565_v50 = vadd.f32 %v549_v62, %v512_v58 }
  0x5e   : > { %v665_v9 = vadd.f32 %v649_v53, %v612_v29 }
  0x5f   : > { %v620_v37 = vadd.f32 %v604_v19, %v565_v50 }
  0x60   : > { %v750_v6 = vld [vmem:[#allocation2 + $0x30] sm:$0xff]  ;;  %v718_v30 = vadd.f32 %v702_v5, %v665_v9 }
  0x61   : > { %1271 = vmatprep.mubr.msk.f32.mxu0 %vm727_vm1, %v750_v6  ;;  %v673_v10 = vadd.f32 %v657_v18, %v620_v37 }
  0x62   : > { %735 = vst.msk [vmem:[#allocation2 + $0x38] sm:$0xff] %vm727_vm1, %v718_v30 }
  0x63   : > { %v726_v41 = vadd.f32 %v710_v54, %v673_v10 }
  0x64   : > { %v758_v13 = vld [vmem:[#allocation2 + $0x70] sm:$0xff] }
  0x65   : > { %1283 = vmatprep.mubr.msk.f32.mxu1 %vm727_vm1, %v758_v13  ;;  %743 = vst.msk [vmem:[#allocation2 + $0x78] sm:$0xff] %vm727_vm1, %v726_v41 }
  0x69   : > { %v751_v14 = vld [vmem:[#allocation2 + $0x38] sm:$0xff] }
  0x6a   : > { %1272 = vmatmul.mubr.msk.f32.gmra.mxu0 %vm727_vm1, %v751_v14 }
  0x6c   : > { %v759_v15 = vld [vmem:[#allocation2 + $0x78] sm:$0xff] }
  0x6d   : > { %1284 = vmatmul.mubr.msk.f32.gmra.mxu1 %vm727_vm1, %v759_v15 }
  0xf6   : > { %v1264_v16 = vpop.f32.mrf.mxu0 }
  0xf7   : > { %960 = vst [vmem:[%s1936_s7 + $0x8] sm:$0xff] %v1264_v16 }
  0xf8   : > { %v880_v56 = vpop.f32.mrf.mxu0 }
  0xf9   : > { %959 = vst [vmem:[%s1936_s7] sm:$0xff] %v880_v56 }
  0xfa   : > { %v1276_v32 = vpop.f32.mrf.mxu1 }
  0xfb   : > { %968 = vst [vmem:[%s1936_s7 + $0x48] sm:$0xff] %v1276_v32 }
  0xfc   : > { %v920_v48 = vpop.f32.mrf.mxu1 }
  0xfd   : > { %967 = vst [vmem:[%s1936_s7 + $0x40] sm:$0xff] %v920_v48 }
 0x107   : > { %v1267_v33 = vpop.f32.mrf.mxu0 }
 0x108   : > { %962 = vst [vmem:[%s1936_s7 + $0x18] sm:$0xff] %v1267_v33 }
 0x109   : > { %v890_v22 = vpop.f32.mrf.mxu0 }
 0x10a   : > { %961 = vst [vmem:[%s1936_s7 + $0x10] sm:$0xff] %v890_v22 }
 0x10b   : > { %v1279_v44 = vpop.f32.mrf.mxu1 }
 0x10c   : > { %970 = vst [vmem:[%s1936_s7 + $0x58] sm:$0xff] %v1279_v44 }
 0x10d   : > { %v930_v59 = vpop.f32.mrf.mxu1 }
 0x10e   : > { %969 = vst [vmem:[%s1936_s7 + $0x50] sm:$0xff] %v930_v59 }
 0x118   : > { %v1270_v49 = vpop.f32.mrf.mxu0 }
 0x119   : > { %964 = vst [vmem:[%s1936_s7 + $0x28] sm:$0xff] %v1270_v49 }
 0x11a   : > { %v900_v38 = vpop.f32.mrf.mxu0 }
 0x11b   : > { %963 = vst [vmem:[%s1936_s7 + $0x20] sm:$0xff] %v900_v38 }
 0x11d   : > { %v1282_v63 = vpop.f32.mrf.mxu1 }
 0x11e   : > { %972 = vst [vmem:[%s1936_s7 + $0x68] sm:$0xff] %v1282_v63 }
 0x11f   : > { %v940_v31 = vpop.f32.mrf.mxu1 }
 0x120   : > { %971 = vst [vmem:[%s1936_s7 + $0x60] sm:$0xff] %v940_v31 }
 0x12a   : > { %v1273_v12 = vpop.f32.mrf.mxu0 }
 0x12b   : > { %966 = vst [vmem:[%s1936_s7 + $0x38] sm:$0xff] %v1273_v12 }
 0x12c   : > { %v910_v51 = vpop.f32.mrf.mxu0 }
 0x12d   : > { %965 = vst [vmem:[%s1936_s7 + $0x30] sm:$0xff] %v910_v51  ;;  %v1285_v23 = vpop.f32.mrf.mxu1 }
 0x12e   : > { %974 = vst [vmem:[%s1936_s7 + $0x78] sm:$0xff] %v1285_v23 }
 0x12f   : > { %v950_v60 = vpop.f32.mrf.mxu1 }
 0x130   : > { %973 = vst [vmem:[%s1936_s7 + $0x70] sm:$0xff] %v950_v60 }
 0x131 PF: > { %s13_s16 = sadd.s32 1, %s1368_s16   ;;  %s1973_s12 = smov %s1360_s14 }
 0x132   : > { %p10_p8 = scmp.ge.s32.totalorder %s13_s16, 6   ;;  %s1974_s13 = smov %s1364_s15 }
 0x133   : > { %s1975_s14 = smov %s1978_s17  ;;  %s1976_s15 = smov %s1982_s18 }
 0x134   :  { %12 = sbr.rel (!%p10_p8) target bundleno = 3 (0x3), region = 73 }

</bundles_post_ra>
